<compile_context>
chip_gen: v6e
topology: v6e:2x2x1
jax: 0.10.0
libtpu: 0.0.40
codegen_flags: <defaults>
</compile_context>

<pallas_src>
import jax
import jax.numpy as jnp
from jax.experimental import pallas as pl
from jax.experimental.pallas import tpu as pltpu


def _round_up(x, m):
    return ((x + m - 1) // m) * m


def _cdiv(a, b):
    return -(-a // b)


def _classify_kernel(w_ref, b_ref, *refs):
    """w_ref: SMEM (D,), b_ref: SMEM (1,), refs = D x VMEM (tm,128) inputs + 1 output."""
    x_refs, o_ref = refs[:-1], refs[-1]
    # D is tiny (2); this Python loop fully unrolls at trace time.
    z = w_ref[0] * x_refs[0][...]                 # SMEM scalar * lane-dense vreg block
    for dd in range(1, len(x_refs)):
        z = z + w_ref[dd] * x_refs[dd][...]
    o_ref[...] = jax.nn.sigmoid(z + b_ref[0])     # exp on the EUP, full-width vst


def classify_forward(x, w_torch, b, *, tm_cap=4096, small_n_threshold=16384,
                     force_pallas=False):
    """sigmoid(x @ w_torch.T + b)

    x:       [N, D] float32   (torch.nn.Linear input layout)
    w_torch: [O, D] float32   (torch nn.Linear weight layout, O must be 1)
    b:       [O]    float32
    returns: [N, O] float32
    """
    x = jnp.asarray(x, jnp.float32)
    n, d = x.shape
    w2d = jnp.asarray(w_torch, jnp.float32).reshape(-1, d)
    bv = jnp.asarray(b, jnp.float32).reshape(-1)
    o = w2d.shape[0]
    assert o == 1, "Classify module has output_size=1"

    # Small-N fast path: kernel launch + relayout dominates below ~tens of
    # thousands of rows; plain XLA is strictly cheaper there.
    if not force_pallas and n < small_n_threshold:
        return jax.nn.sigmoid(x @ w2d.T + bv)

    w_flat = w2d.reshape(-1)                      # (D,) scalars for SMEM

    # Dense lane-major slabs: one (rows, 128) slab per input feature.
    # Pad N only to a multiple of 8*128 so rows is a multiple of 8 (<=1023 waste rows).
    n_pad = _round_up(n, 8 * 128)
    rows = n_pad // 128
    cols = [jnp.pad(x[:, j], (0, n_pad - n)).reshape(rows, 128) for j in range(d)]

    # Block sizing: MiB-scale per step, but capped at ~half the rows so the
    # grid has >=2 steps (v7x: two TensorCores share the "parallel" axis).
    half_rows = _round_up(_cdiv(rows, 2), 8)
    tm = max(8, min(tm_cap, half_rows, rows))
    grid = (_cdiv(rows, tm),)                     # ragged last block masked by Pallas

    n_elems = rows * 128
    cost = pl.CostEstimate(
        flops=3 * d * n_elems,                    # d mul + d add + bias add per element
        transcendentals=n_elems,                  # one exp per element
        bytes_accessed=(d + 1) * n_elems * 4,     # read d slabs, write 1 slab
    )

    out = pl.pallas_call(
        _classify_kernel,
        out_shape=jax.ShapeDtypeStruct((rows, 128), jnp.float32),
        grid_spec=pl.GridSpec(
            grid=grid,
            in_specs=[
                pl.BlockSpec(memory_space=pltpu.MemorySpace.SMEM),   # w (D,) scalars
                pl.BlockSpec(memory_space=pltpu.MemorySpace.SMEM),   # b (1,) scalar
            ] + [
                pl.BlockSpec((tm, 128), lambda i: (i, 0))            # x_j (tm,128)
                for _ in range(d)
            ],
            out_specs=pl.BlockSpec((tm, 128), lambda i: (i, 0)),     # out (tm,128)
        ),
        compiler_params=pltpu.CompilerParams(
            dimension_semantics=("parallel",),
            vmem_limit_bytes=32 * 1024 * 1024,
        ),
        cost_estimate=cost,
    )(w_flat, bv, *cols)

    # Drop padding; add the trailing O=1 dim only here to match torch's (N, 1).
    return out.reshape(-1)[:n].reshape(n, 1)


if __name__ == "__main__":
    # Shapes implied by the module's get_params(): input_size=2, output_size=1.
    batch = 8
    input_size = 2
    output_size = 1

    key = jax.random.PRNGKey(0)
    kx, kw, kb = jax.random.split(key, 3)

    x = jax.random.normal(kx, (batch, input_size), dtype=jnp.float32)
    w_torch = jax.random.normal(kw, (output_size, input_size), dtype=jnp.float32) * 0.5
    b_torch = jax.random.normal(kb, (output_size,), dtype=jnp.float32) * 0.1

    ref = jax.nn.sigmoid(x @ w_torch.T + b_torch)

    # 1) Module-scale batch, forced through the Pallas kernel.
    pred_y = classify_forward(x, w_torch, b_torch, force_pallas=True)
    jax.block_until_ready(pred_y)
    assert pred_y.shape == (batch, output_size)
    assert jnp.allclose(pred_y, ref, atol=1e-5, rtol=1e-5)

    # 2) Larger, non-aligned batch: multi-step parallel grid, MiB-scale blocks,
    #    ragged (masked) last block.
    big_n = 131072 + 37
    xb = jax.random.normal(kx, (big_n, input_size), dtype=jnp.float32)
    pred_big = classify_forward(xb, w_torch, b_torch)
    jax.block_until_ready(pred_big)
    ref_big = jax.nn.sigmoid(xb @ w_torch.T + b_torch)
    assert pred_big.shape == (big_n, output_size)
    assert jnp.allclose(pred_big, ref_big, atol=1e-5, rtol=1e-5)

    # 3) Small-N fast path (pure jnp, no kernel launch) still matches.
    pred_small = classify_forward(x, w_torch, b_torch)
    jax.block_until_ready(pred_small)
    assert jnp.allclose(pred_small, ref, atol=1e-5, rtol=1e-5)

    print("KERNEL_OK")
</pallas_src>

<mosaic_0001>
module attributes {stable_mosaic.version = 11 : i64} {
  func.func @_classify_kernel(%arg0: i32, %arg1: memref<2xf32, #tpu.memory_space<smem>>, %arg2: memref<1xf32, #tpu.memory_space<smem>>, %arg3: memref<8x128xf32, #tpu.memory_space<vmem>>, %arg4: memref<8x128xf32, #tpu.memory_space<vmem>>, %arg5: memref<8x128xf32, #tpu.memory_space<vmem>>) attributes {dimension_semantics = [#tpu.dimension_semantics<parallel>], iteration_bounds = array<i64: 1>, scalar_prefetch = 0 : i64, scratch_operands = 0 : i64, tpu.core_type = #tpu.core_type<tc>, window_params = [{transform_indices = @transform_0, window_bounds = array<i64: 2>}, {transform_indices = @transform_1, window_bounds = array<i64: 1>}, {transform_indices = @transform_2, window_bounds = array<i64: 8, 128>}, {transform_indices = @transform_3, window_bounds = array<i64: 8, 128>}, {transform_indices = @transform_4, window_bounds = array<i64: 8, 128>}]} {
    %c0 = arith.constant 0 : index
    %0 = memref.load %arg1[%c0] : memref<2xf32, #tpu.memory_space<smem>>
    %c0_0 = arith.constant 0 : index
    %c0_1 = arith.constant 0 : index
    %1 = vector.load %arg3[%c0_0, %c0_1] : memref<8x128xf32, #tpu.memory_space<vmem>>, vector<8x128xf32>
    %2 = vector.broadcast %0 : f32 to vector<8x128xf32>
    %3 = arith.mulf %2, %1 : vector<8x128xf32>
    %c1 = arith.constant 1 : index
    %4 = memref.load %arg1[%c1] : memref<2xf32, #tpu.memory_space<smem>>
    %c0_2 = arith.constant 0 : index
    %c0_3 = arith.constant 0 : index
    %5 = vector.load %arg4[%c0_2, %c0_3] : memref<8x128xf32, #tpu.memory_space<vmem>>, vector<8x128xf32>
    %6 = vector.broadcast %4 : f32 to vector<8x128xf32>
    %7 = arith.mulf %6, %5 : vector<8x128xf32>
    %8 = arith.addf %3, %7 : vector<8x128xf32>
    %c0_4 = arith.constant 0 : index
    %9 = memref.load %arg2[%c0_4] : memref<1xf32, #tpu.memory_space<smem>>
    %10 = vector.broadcast %9 : f32 to vector<8x128xf32>
    %11 = arith.addf %8, %10 : vector<8x128xf32>
    %12 = arith.negf %11 : vector<8x128xf32>
    %13 = math.exp %12 : vector<8x128xf32>
    %cst = arith.constant 1.000000e+00 : f32
    %14 = vector.broadcast %cst : f32 to vector<8x128xf32>
    %15 = arith.addf %14, %13 : vector<8x128xf32>
    %16 = arith.divf %14, %15 : vector<8x128xf32>
    %c0_5 = arith.constant 0 : index
    %c0_6 = arith.constant 0 : index
    %17 = vector.load %arg5[%c0_5, %c0_6] : memref<8x128xf32, #tpu.memory_space<vmem>>, vector<8x128xf32>
    tpu.vector_store %arg5[%c0_5, %c0_6], %16 {strides = array<i32>} : memref<8x128xf32, #tpu.memory_space<vmem>>, vector<8x128xf32>,
    return
  }
  func.func @transform_0(%arg0: i32) -> i32 {
    %c0_i32 = arith.constant 0 : i32
    %c0_i32_0 = arith.constant 0 : i32
    return %c0_i32 : i32
  }
  func.func @transform_1(%arg0: i32) -> i32 {
    %c0_i32 = arith.constant 0 : i32
    %c0_i32_0 = arith.constant 0 : i32
    return %c0_i32 : i32
  }
  func.func @transform_2(%arg0: i32) -> (i32, i32) {
    %c0_i32 = arith.constant 0 : i32
    %c0_i32_0 = arith.constant 0 : i32
    return %arg0, %c0_i32 : i32, i32
  }
  func.func @transform_3(%arg0: i32) -> (i32, i32) {
    %c0_i32 = arith.constant 0 : i32
    %c0_i32_0 = arith.constant 0 : i32
    return %arg0, %c0_i32 : i32, i32
  }
  func.func @transform_4(%arg0: i32) -> (i32, i32) {
    %c0_i32 = arith.constant 0 : i32
    %c0_i32_0 = arith.constant 0 : i32
    return %arg0, %c0_i32 : i32, i32
  }
}

</mosaic_0001>

<bundles_post_ra>
// kernel: tpu_custom_call.1
= control target key start
LH: loop header
LB: loop body
LE: loop exit
PB: predicated region body
PF: predicated region fallthrough
CT: control target
= control target key end

     0   :  { %10 = vsyncpa [#allocation6], 0  ;;  %s226_s0 = inlined_call_operand.vmem [shape: f32[2], index: 0, kind: input, shape index: {}]   ;;  %s227_s1 = inlined_call_operand.<no memory space> [shape: f32[1], index: 1, kind: input, shape index: {}]   ;;  %s228_s2 = inlined_call_operand.hbm [shape: f32[8,128], index: 2, kind: input, shape index: {}]   ;;  %s229_s3 = inlined_call_operand.hbm [shape: f32[8,128], index: 3, kind: input, shape index: {}]   ;;  %s230_s4 = inlined_call_operand.hbm [shape: f32[8,128], index: 4, kind: output, shape index: {}]  }
   0x1   :  { %11 = vsyncpa [#allocation4], 0 }
   0x2   :  { %12 = vsyncpa [#allocation9], 0 }
   0x3   :  { %13 = vsyncpa [#allocation5], 0  ;;  %s20_s17 = sshll.u32 %s226_s0, 4  ;;  %s21_s17 = int_to_ptr.vmem [resolvable:$true] %s20_s17 }
   0x4   :  { %s102_s18 = scalar_lea.vmem %s21_s17, 16  ;;  %p107_p1 = scmp.lt.s32.totalorder %s21_s17, %s21_s17 }
   0x5   :  { %p103_p0 = scmp.ne.s32.totalorder %s21_s17, %s102_s18  ;;  %p108_p2 = scmp.lt.s32.totalorder %s102_s18, %s102_s18 }
   0x7   :  { %p109_p3 = por %p108_p2, %p107_p1 }
   0x9   :  { %p110_p4 = pnand %p109_p3, %p103_p0 }
   0xb   :  { %113 = shalt.err (!%p110_p4)
}
   0xc   :  { %s182_s19 = smov [#allocation3]   ;;  %s183_s20 = smov [#allocation7]  }
   0xd   :  { %23 = dma.vmem_to_smem %s21_s17, 16, %s182_s19, [#allocation6]  }
   0xe   :  { %s32_s21 = sshll.u32 %s183_s20, 4  ;;  %s184_s22 = smov [#allocation8]   ;;  %s33_s21 = int_to_ptr.vmem [resolvable:$true] %s32_s21 }
   0xf   :  { %s42_s23 = sshll.u32 %s184_s22, 4  ;;  %s122_s24 = scalar_lea.vmem %s33_s21, 128  ;;  %s43_s23 = int_to_ptr.vmem [resolvable:$true] %s42_s23 }
  0x10   :  { %p123_p5 = scmp.ne.s32.totalorder %s33_s21, %s122_s24  ;;  %p127_p6 = scmp.lt.s32.totalorder %s33_s21, %s33_s21 }
  0x11   :  { %p128_p7 = scmp.lt.s32.totalorder %s122_s24, %s122_s24 }
  0x13   :  { %p129_p8 = por %p128_p7, %p127_p6 }
  0x15   :  { %p130_p9 = pnand %p129_p8, %p123_p5 }
  0x17   :  { %133 = shalt.err (!%p130_p9)
}
  0x18   :  { %35 = dma.hbm_to_vmem [thread:$0]  %s228_s2, 128, %s33_s21, [#allocation4]  }
  0x19   :  { %s142_s26 = scalar_lea.vmem %s43_s23, 128  ;;  %p147_p11 = scmp.lt.s32.totalorder %s43_s23, %s43_s23 }
  0x1a   :  { %p143_p10 = scmp.ne.s32.totalorder %s43_s23, %s142_s26  ;;  %p148_p12 = scmp.lt.s32.totalorder %s142_s26, %s142_s26 }
  0x1c   :  { %p149_p13 = por %p148_p12, %p147_p11 }
  0x1e   :  { %p150_p0 = pnand %p149_p13, %p143_p10 }
  0x20   :  { %153 = shalt.err (!%p150_p0)
}
  0x21   :  { %45 = dma.hbm_to_vmem [thread:$0]  %s229_s3, 128, %s43_s23, [#allocation9]  }
  0x22   :  { %174 = dma.done.wait [#allocation6], 16  }
  0x23   :  { %175 = vsyncadd [#allocation6], 4294967280 }
  0x24   :  { %176 = dma.done.wait [#allocation4], 128  }
  0x25   :  { %177 = vsyncadd [#allocation4], 4294967168 }
  0x26   :  { %178 = dma.done.wait [#allocation9], 128  }
  0x27   :  { %179 = vsyncadd [#allocation9], 4294967168 }
  0x28   :  { %55 = sfence }
  0x29   :  { %s56_s2 = sld [smem:[#allocation3]]  ;;  %v57_v0 = vld [vmem:[#allocation7] sm:$0xff]  ;;  %v61_v1 = vld [vmem:[#allocation8] sm:$0xff]  ;;  %v66_v6 = vstv %s227_s1  ;;  %s185_s3 = smov [#allocation10]  }
  0x2a   :  { %s92_s29 = sld [smem:[#allocation3 + $0x1]]  ;;  %s81_s6 = sshll.u32 %s185_s3, 4  ;;  %s82_s6 = int_to_ptr.vmem [resolvable:$true] %s81_s6 }
  0x2b   :  { %s154_s7 = scalar_lea.vmem %s82_s6, 128  ;;  %p159_p2 = scmp.lt.s32.totalorder %s82_s6, %s82_s6 }
  0x2c   :  { %p155_p1 = scmp.ne.s32.totalorder %s82_s6, %s154_s7  ;;  %p160_p3 = scmp.lt.s32.totalorder %s154_s7, %s154_s7 }
  0x2e   :  { %p161_p4 = por %p160_p3, %p159_p2 }
  0x2f   :  { %v58_v2 = vstv %s56_s2 }
  0x30   :  { %v59_v3 = vmul.f32 %v58_v2, %v57_v0  ;;  %v62_v4 = vstv %s92_s29  ;;  %p162_p5 = pnand %p161_p4, %p155_p1 }
  0x31   :  { %v63_v5 = vmul.f32 %v62_v4, %v61_v1 }
  0x33   :  { %v64_v7 = vadd.f32 %v63_v5, %v59_v3 }
  0x35   :  { %v67_v8 = vadd.f32 %v66_v6, %v64_v7 }
  0x37   :  { %v93_v9 = vmul.f32 -1.442695, %v67_v8 }
  0x39   :  { %98 = vpow2.f32 %v93_v9 }
  0x46   :  { %v99_v10 = vpop.eup %98 }
  0x47   :  { %v71_v11 = vadd.f32 1.0, %v99_v10 }
  0x49   :  { %100 = vrcp.f32 %v71_v11 }
  0x56   :  { %v101_v12 = vpop.eup %100 }
  0x57   :  { %74 = vst [vmem:[#allocation10] sm:$0xff] %v101_v12 }
  0x58   :  { %165 = shalt.err (!%p162_p5)
}
  0x59   :  { %84 = dma.vmem_to_hbm [thread:$0]  %s82_s6, 128, %s230_s4, [#allocation5]  }
  0x5a   :  { %180 = dma.done.wait [#allocation5], 128  }
  0x5b   :  { %181 = vsyncadd [#allocation5], 4294967168 }
  0x5c   :  { %88 = vsyncpa [#allocation4], 1 }
  0x5d   :  { %89 = vsyncpa [#allocation9], 1 }
  0x5e   :  { %90 = vsyncpa [#allocation5], 1 }
  0x5f   :  { %91 = vsyncpa [#allocation6], 1 }

</bundles_post_ra>
